<compile_context>
chip_gen: v7x
topology: tpu7x:2x2x1
jax: 0.10.0
libtpu: 0.0.40
codegen_flags: <defaults>
</compile_context>

<pallas_src>
import functools

import jax
import jax.numpy as jnp
from jax.experimental import pallas as pl
from jax.experimental.pallas import tpu as pltpu

NEG_SLOPE = 0.01        # nn.LeakyReLU default negative_slope
NCLASSES = 9
PAD_OUT = 128           # lane-dense padded output width (9 -> 128)
D_IN, D_H1, D_H2 = 768, 512, 256


def _leaky_relu(x):
    # single mul + max on the VPU (instead of compare + select)
    return jnp.maximum(x, NEG_SLOPE * x)


def _round_up(v, m):
    return ((v + m - 1) // m) * m


def _vmem_capacity_bytes():
    """Best-effort per-generation VMEM query; conservative fallback (v7x 64 MiB)."""
    try:
        info = pltpu.get_tpu_info()
        for attr in ("vmem_capacity_bytes", "vmem_size_bytes", "vmem_bytes"):
            v = getattr(info, attr, None)
            if v:
                return int(v)
    except Exception:
        pass
    return 64 * 1024 * 1024


_VMEM_BYTES = _vmem_capacity_bytes()
# v5e/v6e (128 MiB): bigger tiles amortize per-step pipeline overhead.
# v7x (64 MiB): keep tiles smaller so per-TC buffers fit comfortably.
_DEFAULT_BLOCK_B = 4096 if _VMEM_BYTES >= 96 * (1 << 20) else 2048
_VMEM_LIMIT_BYTES = max(32 * (1 << 20), min((_VMEM_BYTES * 3) // 4, 96 * (1 << 20)))


def hccd_kernel(x_ref, w1_ref, b1_ref, w2_ref, b2_ref, w3_ref, b3_ref, o_ref):
    x = x_ref[...]                                            # bf16 (tb, 768)
    # Layer 1: Linear(768 -> 512) + LeakyReLU   (Dropout = identity, eval mode)
    h = jnp.dot(x, w1_ref[...], preferred_element_type=jnp.float32)
    h = _leaky_relu(h + b1_ref[...])                          # f32 elementwise
    h = h.astype(jnp.bfloat16)                                # bf16 into next MXU
    # Layer 2: Linear(512 -> 256) + LeakyReLU   (Dropout = identity, eval mode)
    h = jnp.dot(h, w2_ref[...], preferred_element_type=jnp.float32)
    h = _leaky_relu(h + b2_ref[...])
    h = h.astype(jnp.bfloat16)
    # Layer 3: Linear(256 -> 9), padded to 128 lanes for unmasked stores
    o = jnp.dot(h, w3_ref[...], preferred_element_type=jnp.float32)
    o_ref[...] = (o + b3_ref[...]).astype(o_ref.dtype)


def prepare_params(params):
    """One-time prep: cast weights to bf16, pad layer-3 to 128 output lanes."""
    w1, b1, w2, b2, w3, b3 = params
    w3p = jnp.zeros((w3.shape[0], PAD_OUT), jnp.float32).at[:, :NCLASSES].set(w3)
    b3p = jnp.zeros((1, PAD_OUT), jnp.float32).at[:, :NCLASSES].set(b3)
    return (w1.astype(jnp.bfloat16), b1.astype(jnp.float32),
            w2.astype(jnp.bfloat16), b2.astype(jnp.float32),
            w3p.astype(jnp.bfloat16), b3p.astype(jnp.float32))


def _choose_tile(B, block_b):
    """Balanced batch tiling: multiples of 16 (bf16 sublanes), minimal tail pad,
    and >=2 grid steps when feasible so v7x megacore shards the batch axis."""
    n_tiles = max(pl.cdiv(B, block_b), 1)
    if B >= 32:
        n_tiles = max(n_tiles, 2)
    tb = _round_up(pl.cdiv(B, n_tiles), 16)
    tb = min(tb, _round_up(block_b, 16))
    b_pad = _round_up(B, tb)
    return tb, b_pad


@functools.partial(jax.jit, static_argnames=("block_b", "vmem_limit_bytes"))
def hccd_forward(x, prepped_params, block_b=_DEFAULT_BLOCK_B,
                 vmem_limit_bytes=_VMEM_LIMIT_BYTES):
    """x: [B, 768] float32 (or bfloat16) -> [B, 9] float32."""
    w1, b1, w2, b2, w3, b3 = prepped_params
    B = x.shape[0]

    tb, b_pad = _choose_tile(B, block_b)
    if b_pad != B:
        x = jnp.pad(x, ((0, b_pad - B), (0, 0)))
    # Stream x in bf16 (halves the dominant HBM input traffic; ideally the
    # producer already emits bf16 so this cast fuses upstream).
    x = x.astype(jnp.bfloat16)
    grid = (b_pad // tb,)

    resident = lambda i: (0, 0)   # weights/biases: same block every grid step

    flops = 2 * b_pad * (D_IN * D_H1 + D_H1 * D_H2 + D_H2 * PAD_OUT)
    bytes_accessed = (
        (w1.size + w2.size + w3.size) * 2            # bf16 weights
        + (b1.size + b2.size + b3.size) * 4          # f32 biases
        + b_pad * D_IN * 2                           # bf16 x stream in
        + b_pad * PAD_OUT * 4                        # padded f32 out
    )

    out = pl.pallas_call(
        hccd_kernel,
        out_shape=jax.ShapeDtypeStruct((b_pad, PAD_OUT), jnp.float32),
        grid=grid,
        in_specs=[
            pl.BlockSpec((tb, D_IN), lambda i: (i, 0)),
            pl.BlockSpec(w1.shape, resident),
            pl.BlockSpec(b1.shape, resident),
            pl.BlockSpec(w2.shape, resident),
            pl.BlockSpec(b2.shape, resident),
            pl.BlockSpec(w3.shape, resident),
            pl.BlockSpec(b3.shape, resident),
        ],
        out_specs=pl.BlockSpec((tb, PAD_OUT), lambda i: (i, 0)),
        compiler_params=pltpu.CompilerParams(
            dimension_semantics=("parallel",),        # megacore sharding on v7x
            vmem_limit_bytes=int(vmem_limit_bytes),
        ),
        cost_estimate=pl.CostEstimate(
            flops=int(flops), transcendentals=0,
            bytes_accessed=int(bytes_accessed)),
    )(x, w1, b1, w2, b2, w3, b3)

    return out[:B, :NCLASSES]


def init_params(key):
    """Deterministic synthetic parameters matching nn.Linear shapes."""
    ks = jax.random.split(key, 6)

    def lin(kw, kb, fan_in, fan_out):
        bound = 1.0 / jnp.sqrt(fan_in)
        w = jax.random.uniform(kw, (fan_in, fan_out), jnp.float32, -bound, bound)
        b = jax.random.uniform(kb, (1, fan_out), jnp.float32, -bound, bound)
        return w, b

    w1, b1 = lin(ks[0], ks[1], D_IN, D_H1)
    w2, b2 = lin(ks[2], ks[3], D_H1, D_H2)
    w3, b3 = lin(ks[4], ks[5], D_H2, NCLASSES)
    return (w1, b1, w2, b2, w3, b3)


def reference_forward(x, prepped_params):
    """Pure-JAX reference mirroring the kernel's bf16-in / f32-accumulate dataflow."""
    w1, b1, w2, b2, w3, b3 = prepped_params
    xb = x.astype(jnp.bfloat16)
    h = jnp.dot(xb, w1, preferred_element_type=jnp.float32)
    h = _leaky_relu(h + b1).astype(jnp.bfloat16)
    h = jnp.dot(h, w2, preferred_element_type=jnp.float32)
    h = _leaky_relu(h + b2).astype(jnp.bfloat16)
    o = jnp.dot(h, w3, preferred_element_type=jnp.float32) + b3
    return o[:, :NCLASSES]


if __name__ == "__main__":
    key = jax.random.PRNGKey(0)
    kx, kp = jax.random.split(key)

    params = init_params(kp)
    prepped = prepare_params(params)

    # Tile-aligned batch, ragged batch (tail padding), and a batch large enough
    # to exercise grid >= 2 (megacore path).
    for B in (8, 13, 40):
        x = jax.random.normal(kx, (B, D_IN), dtype=jnp.float32)
        out = jax.block_until_ready(hccd_forward(x, prepped))
        ref = reference_forward(x, prepped)
        assert out.shape == (B, NCLASSES), out.shape
        assert jnp.allclose(out, ref, atol=2e-2, rtol=2e-2), (
            f"B={B} max abs err {jnp.max(jnp.abs(out - ref))}"
        )

    print("KERNEL_OK")
</pallas_src>

<mosaic_0001>
module attributes {stable_mosaic.version = 11 : i64} {
  func.func @hccd_kernel(%arg0: i32, %arg1: memref<16x768xbf16, #tpu.memory_space<vmem>>, %arg2: memref<768x512xbf16, #tpu.memory_space<vmem>>, %arg3: memref<1x512xf32, #tpu.memory_space<vmem>>, %arg4: memref<512x256xbf16, #tpu.memory_space<vmem>>, %arg5: memref<1x256xf32, #tpu.memory_space<vmem>>, %arg6: memref<256x128xbf16, #tpu.memory_space<vmem>>, %arg7: memref<1x128xf32, #tpu.memory_space<vmem>>, %arg8: memref<16x128xf32, #tpu.memory_space<vmem>>) attributes {dimension_semantics = [#tpu.dimension_semantics<parallel>], iteration_bounds = array<i64: 1>, scalar_prefetch = 0 : i64, scratch_operands = 0 : i64, tpu.core_type = #tpu.core_type<tc>, window_params = [{transform_indices = @transform_0, window_bounds = array<i64: 16, 768>}, {pipeline_mode = #tpu.pipeline_mode<synchronous>, transform_indices = @transform_1, window_bounds = array<i64: 768, 512>}, {pipeline_mode = #tpu.pipeline_mode<synchronous>, transform_indices = @transform_2, window_bounds = array<i64: 1, 512>}, {pipeline_mode = #tpu.pipeline_mode<synchronous>, transform_indices = @transform_3, window_bounds = array<i64: 512, 256>}, {pipeline_mode = #tpu.pipeline_mode<synchronous>, transform_indices = @transform_4, window_bounds = array<i64: 1, 256>}, {pipeline_mode = #tpu.pipeline_mode<synchronous>, transform_indices = @transform_5, window_bounds = array<i64: 256, 128>}, {pipeline_mode = #tpu.pipeline_mode<synchronous>, transform_indices = @transform_6, window_bounds = array<i64: 1, 128>}, {transform_indices = @transform_7, window_bounds = array<i64: 16, 128>}]} {
    %c0 = arith.constant 0 : index
    %c0_0 = arith.constant 0 : index
    %0 = vector.load %arg1[%c0, %c0_0] : memref<16x768xbf16, #tpu.memory_space<vmem>>, vector<16x768xbf16>
    %c0_1 = arith.constant 0 : index
    %c0_2 = arith.constant 0 : index
    %1 = vector.load %arg2[%c0_1, %c0_2] : memref<768x512xbf16, #tpu.memory_space<vmem>>, vector<768x512xbf16>
    %cst = arith.constant dense<0.000000e+00> : vector<16x512xf32>
    %2 = tpu.matmul %0, %1, %cst {dimension_numbers = #tpu.dot_dimension_numbers<[1], [0], [0], [1], [0, 0, 1, 1], [], []>} : vector<16x768xbf16>, vector<768x512xbf16>, vector<16x512xf32> -> vector<16x512xf32>
    %c0_3 = arith.constant 0 : index
    %c0_4 = arith.constant 0 : index
    %3 = vector.load %arg3[%c0_3, %c0_4] : memref<1x512xf32, #tpu.memory_space<vmem>>, vector<1x512xf32>
    %4 = vector.broadcast %3 : vector<1x512xf32> to vector<16x512xf32>
    %5 = arith.addf %2, %4 : vector<16x512xf32>
    %cst_5 = arith.constant 0.00999999977 : f32
    %6 = vector.broadcast %cst_5 : f32 to vector<16x512xf32>
    %7 = arith.mulf %6, %5 : vector<16x512xf32>
    %8 = arith.maximumf %5, %7 : vector<16x512xf32>
    %9 = arith.truncf %8 : vector<16x512xf32> to vector<16x512xbf16>
    %c0_6 = arith.constant 0 : index
    %c0_7 = arith.constant 0 : index
    %10 = vector.load %arg4[%c0_6, %c0_7] : memref<512x256xbf16, #tpu.memory_space<vmem>>, vector<512x256xbf16>
    %cst_8 = arith.constant dense<0.000000e+00> : vector<16x256xf32>
    %11 = tpu.matmul %9, %10, %cst_8 {dimension_numbers = #tpu.dot_dimension_numbers<[1], [0], [0], [1], [0, 0, 1, 1], [], []>} : vector<16x512xbf16>, vector<512x256xbf16>, vector<16x256xf32> -> vector<16x256xf32>
    %c0_9 = arith.constant 0 : index
    %c0_10 = arith.constant 0 : index
    %12 = vector.load %arg5[%c0_9, %c0_10] : memref<1x256xf32, #tpu.memory_space<vmem>>, vector<1x256xf32>
    %13 = vector.broadcast %12 : vector<1x256xf32> to vector<16x256xf32>
    %14 = arith.addf %11, %13 : vector<16x256xf32>
    %cst_11 = arith.constant 0.00999999977 : f32
    %15 = vector.broadcast %cst_11 : f32 to vector<16x256xf32>
    %16 = arith.mulf %15, %14 : vector<16x256xf32>
    %17 = arith.maximumf %14, %16 : vector<16x256xf32>
    %18 = arith.truncf %17 : vector<16x256xf32> to vector<16x256xbf16>
    %c0_12 = arith.constant 0 : index
    %c0_13 = arith.constant 0 : index
    %19 = vector.load %arg6[%c0_12, %c0_13] : memref<256x128xbf16, #tpu.memory_space<vmem>>, vector<256x128xbf16>
    %cst_14 = arith.constant dense<0.000000e+00> : vector<16x128xf32>
    %20 = tpu.matmul %18, %19, %cst_14 {dimension_numbers = #tpu.dot_dimension_numbers<[1], [0], [0], [1], [0, 0, 1, 1], [], []>} : vector<16x256xbf16>, vector<256x128xbf16>, vector<16x128xf32> -> vector<16x128xf32>
    %c0_15 = arith.constant 0 : index
    %c0_16 = arith.constant 0 : index
    %21 = vector.load %arg7[%c0_15, %c0_16] : memref<1x128xf32, #tpu.memory_space<vmem>>, vector<1x128xf32>
    %22 = vector.broadcast %21 : vector<1x128xf32> to vector<16x128xf32>
    %23 = arith.addf %20, %22 : vector<16x128xf32>
    %c0_17 = arith.constant 0 : index
    %c0_18 = arith.constant 0 : index
    %24 = vector.load %arg8[%c0_17, %c0_18] : memref<16x128xf32, #tpu.memory_space<vmem>>, vector<16x128xf32>
    tpu.vector_store %arg8[%c0_17, %c0_18], %23 {strides = array<i32>} : memref<16x128xf32, #tpu.memory_space<vmem>>, vector<16x128xf32>,
    return
  }
  func.func @transform_0(%arg0: i32) -> (i32, i32) {
    %c0_i32 = arith.constant 0 : i32
    %c0_i32_0 = arith.constant 0 : i32
    return %arg0, %c0_i32 : i32, i32
  }
  func.func @transform_1(%arg0: i32) -> (i32, i32) {
    %c0_i32 = arith.constant 0 : i32
    %c0_i32_0 = arith.constant 0 : i32
    %c0_i32_1 = arith.constant 0 : i32
    return %c0_i32, %c0_i32_0 : i32, i32
  }
  func.func @transform_2(%arg0: i32) -> (i32, i32) {
    %c0_i32 = arith.constant 0 : i32
    %c0_i32_0 = arith.constant 0 : i32
    %c0_i32_1 = arith.constant 0 : i32
    return %c0_i32, %c0_i32_0 : i32, i32
  }
  func.func @transform_3(%arg0: i32) -> (i32, i32) {
    %c0_i32 = arith.constant 0 : i32
    %c0_i32_0 = arith.constant 0 : i32
    %c0_i32_1 = arith.constant 0 : i32
    return %c0_i32, %c0_i32_0 : i32, i32
  }
  func.func @transform_4(%arg0: i32) -> (i32, i32) {
    %c0_i32 = arith.constant 0 : i32
    %c0_i32_0 = arith.constant 0 : i32
    %c0_i32_1 = arith.constant 0 : i32
    return %c0_i32, %c0_i32_0 : i32, i32
  }
  func.func @transform_5(%arg0: i32) -> (i32, i32) {
    %c0_i32 = arith.constant 0 : i32
    %c0_i32_0 = arith.constant 0 : i32
    %c0_i32_1 = arith.constant 0 : i32
    return %c0_i32, %c0_i32_0 : i32, i32
  }
  func.func @transform_6(%arg0: i32) -> (i32, i32) {
    %c0_i32 = arith.constant 0 : i32
    %c0_i32_0 = arith.constant 0 : i32
    %c0_i32_1 = arith.constant 0 : i32
    return %c0_i32, %c0_i32_0 : i32, i32
  }
  func.func @transform_7(%arg0: i32) -> (i32, i32) {
    %c0_i32 = arith.constant 0 : i32
    %c0_i32_0 = arith.constant 0 : i32
    return %arg0, %c0_i32 : i32, i32
  }
}

</mosaic_0001>

<bundles_post_ra>
// kernel: hccd_forward.1
= control target key start
LH: loop header
LB: loop body
LE: loop exit
PB: predicated region body
PF: predicated region fallthrough
CT: control target
= control target key end

     0   :  { %12 = vsyncpa [#allocation3], 0  ;;  %s3206_s0 = inlined_call_operand.vmem [shape: bf16[16,768], index: 0, kind: input, shape index: {}]   ;;  %s3207_s1 = inlined_call_operand.hbm [shape: bf16[768,512], index: 1, kind: input, shape index: {}]   ;;  %s3208_s2 = inlined_call_operand.vmem [shape: f32[1,512], index: 2, kind: input, shape index: {}]   ;;  %s3209_s3 = inlined_call_operand.hbm [shape: bf16[512,256], index: 3, kind: input, shape index: {}]   ;;  %s3210_s4 = inlined_call_operand.vmem [shape: f32[1,256], index: 4, kind: input, shape index: {}]   ;;  %s3211_s5 = inlined_call_operand.vmem [shape: bf16[256,128], index: 5, kind: input, shape index: {}]   ;;  %s3212_s6 = inlined_call_operand.vmem [shape: f32[1,128], index: 6, kind: input, shape index: {}]   ;;  %s3213_s7 = inlined_call_operand.vmem [shape: f32[16,128], index: 7, kind: output, shape index: {}]  }
   0x1   :  { %13 = vsyncpa [#allocation5], 0  ;;  %s3015_s24 = smov [#allocation2]   ;;  %s2967_s28 = scalar_lea.hbm %s3207_s1, 24576 }
   0x2   :  { %s21_s25 = sshll.u32 %s3015_s24, 4  ;;  %p2968_p0 = scmp.ne.s32.totalorder %s3207_s1, %s2967_s28  ;;  %s22_s25 = int_to_ptr.vmem [resolvable:$true] %s21_s25 }
   0x3   :  { %p2971_p1 = scmp.lt.u32.totalorder %s2967_s28, %s3207_s1 }
   0x5   :  { %p2973_p2 = pnand %p2971_p1, %p2968_p0 }
   0x7   :  { %2976 = shalt.err (!%p2973_p2)
}
   0x8   :  { %s2977_s10 = scalar_lea.vmem %s22_s25, 24576  ;;  %p2982_p4 = scmp.lt.s32.totalorder %s22_s25, %s22_s25 }
   0x9   :  { %p2978_p3 = scmp.ne.s32.totalorder %s22_s25, %s2977_s10  ;;  %p2983_p5 = scmp.lt.s32.totalorder %s2977_s10, %s2977_s10 }
   0xb   :  { %p2984_p6 = por %p2983_p5, %p2982_p4 }
   0xd   :  { %p2985_p7 = pnand %p2984_p6, %p2978_p3 }
   0xf   :  { %2988 = shalt.err (!%p2985_p7)
}
  0x10   :  { %s3016_s11 = smov 256   ;;  %s3017_s12 = smov 16  }
  0x11   :  { %27 = dma.hbm_to_vmem [thread:$0]  %s3207_s1, 24576, %s22_s25, [#allocation3], %s3016_s11, %s3016_s11, %s3017_s12  }
  0x12   :  { %s3018_s15 = smov [#allocation4]   ;;  %s2989_s19 = scalar_lea.hbm %s3209_s3, 8192 }
  0x13   :  { %s35_s16 = sshll.u32 %s3018_s15, 4  ;;  %p2990_p8 = scmp.ne.s32.totalorder %s3209_s3, %s2989_s19  ;;  %s36_s16 = int_to_ptr.vmem [resolvable:$true] %s35_s16 }
  0x14   :  { %p2993_p9 = scmp.lt.u32.totalorder %s2989_s19, %s3209_s3 }
  0x16   :  { %p2995_p10 = pnand %p2993_p9, %p2990_p8 }
  0x18   :  { %2998 = shalt.err (!%p2995_p10)
}
  0x19   :  { %s2999_s24 = scalar_lea.vmem %s36_s16, 8192  ;;  %p3004_p12 = scmp.lt.s32.totalorder %s36_s16, %s36_s16 }
  0x1a   :  { %p3000_p11 = scmp.ne.s32.totalorder %s36_s16, %s2999_s24  ;;  %p3005_p13 = scmp.lt.s32.totalorder %s2999_s24, %s2999_s24 }
  0x1c   :  { %p3006_p0 = por %p3005_p13, %p3004_p12 }
  0x1e   :  { %p3007_p1 = pnand %p3006_p0, %p3000_p11 }
  0x20   :  { %3010 = shalt.err (!%p3007_p1)
}
  0x21   :  { %s3019_s1 = smov 128   ;;  %s3020_s25 = smov 8  }
  0x22   :  { %41 = dma.hbm_to_vmem [thread:$0]  %s3209_s3, 8192, %s36_s16, [#allocation5], %s3019_s1, %s3019_s1, %s3020_s25  }
  0x23   :  { %3011 = dma.done.wait [#allocation3], 24576  }
  0x24   :  { %3012 = vsyncadd [#allocation3], 4294942720 }
  0x25   :  { %3013 = dma.done.wait [#allocation5], 8192  }
  0x26   :  { %3014 = vsyncadd [#allocation5], 4294959104  ;;  %v2558_v0 = vld [vmem:[#allocation2 + $0x4] ss:$16 sps:$4 sm:$0xff]   ;;  %v2562_v2 = vld [vmem:[#allocation2] ss:$16 sps:$4 sm:$0xff]  }
  0x27   :  { %v2560_v1 = vld [vmem:[#allocation2 + $0x204] ss:$16 sps:$4 sm:$0xff]   ;;  %1265 = vmatprep.subr.bf16.mxu1 %v2558_v0  ;;  %v2563_v3 = vld [vmem:[#allocation2 + $0x200] ss:$16 sps:$4 sm:$0xff]  }
  0x28   :  { %1308 = vmatprep.subr.bf16.mxu0 %v2560_v1  ;;  %v2564_v4 = vld [vmem:[#allocation2 + $0x24] ss:$16 sps:$4 sm:$0xff]   ;;  %1266 = vmatpush1.bf16.msra.mxu1 %v2562_v2  ;;  %v2568_v6 = vld [vmem:[#allocation2 + $0x20] ss:$16 sps:$4 sm:$0xff]  }
  0x29   :  { %1309 = vmatpush1.bf16.msra.mxu0 %v2563_v3  ;;  %v2566_v5 = vld [vmem:[#allocation2 + $0x224] ss:$16 sps:$4 sm:$0xff]   ;;  %1267 = vmatprep.subr.bf16.mxu1 %v2564_v4  ;;  %v2569_v7 = vld [vmem:[#allocation2 + $0x220] ss:$16 sps:$4 sm:$0xff]   ;;  %v2665_v3 = vld [vmem:[#allocation2 + $0xc] ss:$16 sps:$4 sm:$0xff]  }
  0x2a   :  { %1310 = vmatprep.subr.bf16.mxu0 %v2566_v5  ;;  %v2570_v8 = vld [vmem:[#allocation2 + $0x44] ss:$16 sps:$4 sm:$0xff]   ;;  %v2574_v10 = vld [vmem:[#allocation2 + $0x40] ss:$16 sps:$4 sm:$0xff]  }
  0x2b   :  { %v2572_v9 = vld [vmem:[#allocation2 + $0x244] ss:$16 sps:$4 sm:$0xff]   ;;  %v2575_v11 = vld [vmem:[#allocation2 + $0x240] ss:$16 sps:$4 sm:$0xff]  }
  0x2c   :  { %1268 = vmatpush1.bf16.msra.mxu1 %v2568_v6  ;;  %v2576_v12 = vld [vmem:[#allocation2 + $0x64] ss:$16 sps:$4 sm:$0xff]   ;;  %v2580_v14 = vld [vmem:[#allocation2 + $0x60] ss:$16 sps:$4 sm:$0xff]  }
  0x2d   :  { %1311 = vmatpush1.bf16.msra.mxu0 %v2569_v7  ;;  %1269 = vmatprep.subr.bf16.mxu1 %v2570_v8  ;;  %v2578_v13 = vld [vmem:[#allocation2 + $0x264] ss:$16 sps:$4 sm:$0xff]   ;;  %v2581_v15 = vld [vmem:[#allocation2 + $0x260] ss:$16 sps:$4 sm:$0xff]   ;;  %v2663_v7 = vld [vmem:[#allocation2 + $0x8] ss:$16 sps:$4 sm:$0xff]  }
  0x2e   :  { %1312 = vmatprep.subr.bf16.mxu0 %v2572_v9  ;;  %v2582_v16 = vld [vmem:[#allocation2 + $0x84] ss:$16 sps:$4 sm:$0xff]   ;;  %v2586_v18 = vld [vmem:[#allocation2 + $0x80] ss:$16 sps:$4 sm:$0xff]   ;;  %v2671_v9 = vld [vmem:[#allocation2 + $0x2c] ss:$16 sps:$4 sm:$0xff]  }
  0x2f   :  { %v2584_v17 = vld [vmem:[#allocation2 + $0x284] ss:$16 sps:$4 sm:$0xff]   ;;  %v2587_v19 = vld [vmem:[#allocation2 + $0x280] ss:$16 sps:$4 sm:$0xff]  }
  0x30   :  { %1270 = vmatpush1.bf16.msra.mxu1 %v2574_v10  ;;  %v2588_v20 = vld [vmem:[#allocation2 + $0xa4] ss:$16 sps:$4 sm:$0xff]   ;;  %v2592_v22 = vld [vmem:[#allocation2 + $0xa0] ss:$16 sps:$4 sm:$0xff]  }
  0x31   :  { %1313 = vmatpush1.bf16.msra.mxu0 %v2575_v11  ;;  %1271 = vmatprep.subr.bf16.mxu1 %v2576_v12  ;;  %v2590_v21 = vld [vmem:[#allocation2 + $0x2a4] ss:$16 sps:$4 sm:$0xff]   ;;  %v2593_v23 = vld [vmem:[#allocation2 + $0x2a0] ss:$16 sps:$4 sm:$0xff]   ;;  %v2669_v11 = vld [vmem:[#allocation2 + $0x28] ss:$16 sps:$4 sm:$0xff]  }
  0x32   :  { %1314 = vmatprep.subr.bf16.mxu0 %v2578_v13  ;;  %v2594_v24 = vld [vmem:[#allocation2 + $0xc4] ss:$16 sps:$4 sm:$0xff]   ;;  %v2598_v26 = vld [vmem:[#allocation2 + $0xc0] ss:$16 sps:$4 sm:$0xff]   ;;  %v2677_v13 = vld [vmem:[#allocation2 + $0x4c] ss:$16 sps:$4 sm:$0xff]  }
  0x33   :  { %v2596_v25 = vld [vmem:[#allocation2 + $0x2c4] ss:$16 sps:$4 sm:$0xff]   ;;  %v2599_v27 = vld [vmem:[#allocation2 + $0x2c0] ss:$16 sps:$4 sm:$0xff]  }
  0x34   :  { %1272 = vmatpush1.bf16.msra.mxu1 %v2580_v14  ;;  %v2600_v28 = vld [vmem:[#allocation2 + $0xe4] ss:$16 sps:$4 sm:$0xff]   ;;  %v2604_v30 = vld [vmem:[#allocation2 + $0xe0] ss:$16 sps:$4 sm:$0xff]  }
  0x35   :  { %1315 = vmatpush1.bf16.msra.mxu0 %v2581_v15  ;;  %1273 = vmatprep.subr.bf16.mxu1 %v2582_v16  ;;  %v2602_v29 = vld [vmem:[#allocation2 + $0x2e4] ss:$16 sps:$4 sm:$0xff]   ;;  %v2605_v31 = vld [vmem:[#allocation2 + $0x2e0] ss:$16 sps:$4 sm:$0xff]   ;;  %v2675_v15 = vld [vmem:[#allocation2 + $0x48] ss:$16 sps:$4 sm:$0xff]  }
  0x36   :  { %1316 = vmatprep.subr.bf16.mxu0 %v2584_v17  ;;  %v2606_v32 = vld [vmem:[#allocation2 + $0x104] ss:$16 sps:$4 sm:$0xff]   ;;  %v2610_v34 = vld [vmem:[#allocation2 + $0x100] ss:$16 sps:$4 sm:$0xff]   ;;  %v2683_v17 = vld [vmem:[#allocation2 + $0x6c] ss:$16 sps:$4 sm:$0xff]  }
  0x37   :  { %v2608_v33 = vld [vmem:[#allocation2 + $0x304] ss:$16 sps:$4 sm:$0xff]   ;;  %v2611_v35 = vld [vmem:[#allocation2 + $0x300] ss:$16 sps:$4 sm:$0xff]  }
  0x38   :  { %1274 = vmatpush1.bf16.msra.mxu1 %v2586_v18  ;;  %v2612_v36 = vld [vmem:[#allocation2 + $0x124] ss:$16 sps:$4 sm:$0xff]   ;;  %v2616_v38 = vld [vmem:[#allocation2 + $0x120] ss:$16 sps:$4 sm:$0xff]  }
  0x39   :  { %1317 = vmatpush1.bf16.msra.mxu0 %v2587_v19  ;;  %1275 = vmatprep.subr.bf16.mxu1 %v2588_v20  ;;  %v2614_v37 = vld [vmem:[#allocation2 + $0x324] ss:$16 sps:$4 sm:$0xff]   ;;  %v2617_v39 = vld [vmem:[#allocation2 + $0x320] ss:$16 sps:$4 sm:$0xff]   ;;  %v2681_v19 = vld [vmem:[#allocation2 + $0x68] ss:$16 sps:$4 sm:$0xff]  }
  0x3a   :  { %1318 = vmatprep.subr.bf16.mxu0 %v2590_v21  ;;  %v2618_v40 = vld [vmem:[#allocation2 + $0x144] ss:$16 sps:$4 sm:$0xff]   ;;  %v2622_v42 = vld [vmem:[#allocation2 + $0x140] ss:$16 sps:$4 sm:$0xff]   ;;  %v2689_v21 = vld [vmem:[#allocation2 + $0x8c] ss:$16 sps:$4 sm:$0xff]  }
  0x3b   :  { %v2620_v41 = vld [vmem:[#allocation2 + $0x344] ss:$16 sps:$4 sm:$0xff]   ;;  %v2623_v43 = vld [vmem:[#allocation2 + $0x340] ss:$16 sps:$4 sm:$0xff]  }
  0x3c   :  { %1276 = vmatpush1.bf16.msra.mxu1 %v2592_v22  ;;  %v2624_v44 = vld [vmem:[#allocation2 + $0x164] ss:$16 sps:$4 sm:$0xff]   ;;  %v2628_v46 = vld [vmem:[#allocation2 + $0x160] ss:$16 sps:$4 sm:$0xff]  }
  0x3d   :  { %1319 = vmatpush1.bf16.msra.mxu0 %v2593_v23  ;;  %1277 = vmatprep.subr.bf16.mxu1 %v2594_v24  ;;  %v2626_v45 = vld [vmem:[#allocation2 + $0x364] ss:$16 sps:$4 sm:$0xff]   ;;  %v2629_v47 = vld [vmem:[#allocation2 + $0x360] ss:$16 sps:$4 sm:$0xff]   ;;  %v2687_v23 = vld [vmem:[#allocation2 + $0x88] ss:$16 sps:$4 sm:$0xff]  }
  0x3e   :  { %1320 = vmatprep.subr.bf16.mxu0 %v2596_v25  ;;  %v2630_v48 = vld [vmem:[#allocation2 + $0x184] ss:$16 sps:$4 sm:$0xff]   ;;  %v2634_v52 = vld [vmem:[#allocation2 + $0x180] ss:$16 sps:$4 sm:$0xff]   ;;  %v2695_v25 = vld [vmem:[#allocation2 + $0xac] ss:$16 sps:$4 sm:$0xff]  }
  0x3f   :  { %v2656_v49 = vld [vmem:[%s3206_s0 + $0x4] ss:$24 sps:$4 sm:$0xff]   ;;  %v2635_v53 = vld [vmem:[#allocation2 + $0x380] ss:$16 sps:$4 sm:$0xff]  }
  0x40   :  { %1278 = vmatpush1.bf16.msra.mxu1 %v2598_v26  ;;  %v2632_v50 = vld [vmem:[#allocation2 + $0x384] ss:$16 sps:$4 sm:$0xff]   ;;  %1297 = vmatprep.mubr.bf16.mxu1 %v2656_v49  ;;  %v2640_v56 = vld [vmem:[#allocation2 + $0x1a0] ss:$16 sps:$4 sm:$0xff]  }
  0x41   :  { %1321 = vmatpush1.bf16.msra.mxu0 %v2599_v27  ;;  %1279 = vmatprep.subr.bf16.mxu1 %v2600_v28  ;;  %v3091_v51 = vld [vmem:[%s3206_s0 + $0xc] ss:$24 sps:$4 sm:$0xff]   ;;  %v2641_v57 = vld [vmem:[#allocation2 + $0x3a0] ss:$16 sps:$4 sm:$0xff]   ;;  %v2693_v27 = vld [vmem:[#allocation2 + $0xa8] ss:$16 sps:$4 sm:$0xff]  }
  0x42   :  { %1322 = vmatprep.subr.bf16.mxu0 %v2602_v29  ;;  %1340 = vmatprep.mubr.bf16.mxu0 %v3091_v51  ;;  %v2636_v54 = vld [vmem:[#allocation2 + $0x1a4] ss:$16 sps:$4 sm:$0xff]   ;;  %v2646_v60 = vld [vmem:[#allocation2 + $0x1c0] ss:$16 sps:$4 sm:$0xff]   ;;  %v2701_v29 = vld [vmem:[#allocation2 + $0xcc] ss:$16 sps:$4 sm:$0xff]  }
  0x43   :  { %v2638_v55 = vld [vmem:[#allocation2 + $0x3a4] ss:$16 sps:$4 sm:$0xff]   ;;  %v2647_v61 = vld [vmem:[#allocation2 + $0x3c0] ss:$16 sps:$4 sm:$0xff]  }
  0x44   :  { %1280 = vmatpush1.bf16.msra.mxu1 %v2604_v30  ;;  %v2642_v58 = vld [vmem:[#allocation2 + $0x1c4] ss:$16 sps:$4 sm:$0xff]   ;;  %v2652_v0 = vld [vmem:[#allocation2 + $0x1e0] ss:$16 sps:$4 sm:$0xff]  }
  0x45   :  { %1323 = vmatpush1.bf16.msra.mxu0 %v2605_v31  ;;  %1281 = vmatprep.subr.bf16.mxu1 %v2606_v32  ;;  %v2644_v59 = vld [vmem:[#allocation2 + $0x3c4] ss:$16 sps:$4 sm:$0xff]   ;;  %v2653_v1 = vld [vmem:[#allocation2 + $0x3e0] ss:$16 sps:$4 sm:$0xff]   ;;  %v2699_v31 = vld [vmem:[#allocation2 + $0xc8] ss:$16 sps:$4 sm:$0xff]  }
  0x46   :  { %1324 = vmatprep.subr.bf16.mxu0 %v2608_v33  ;;  %v2648_v62 = vld [vmem:[#allocation2 + $0x1e4] ss:$16 sps:$4 sm:$0xff]   ;;  %v3097_v4 = vld [vmem:[%s3206_s0] ss:$24 sps:$4 sm:$0xff]   ;;  %v2707_v33 = vld [vmem:[#allocation2 + $0xec] ss:$16 sps:$4 sm:$0xff]  }
  0x47   :  { %v2650_v63 = vld [vmem:[#allocation2 + $0x3e4] ss:$16 sps:$4 sm:$0xff]   ;;  %v3102_v5 = vld [vmem:[%s3206_s0 + $0x8] ss:$24 sps:$4 sm:$0xff]  }
  0x48   :  { %1282 = vmatpush1.bf16.msra.mxu1 %v2610_v34  ;;  %v2662_v2 = vld [vmem:[#allocation2 + $0x404] ss:$16 sps:$4 sm:$0xff]   ;;  %v2660_v6 = vld [vmem:[#allocation2 + $0x400] ss:$16 sps:$4 sm:$0xff]  }
  0x49   :  { %1325 = vmatpush1.bf16.msra.mxu0 %v2611_v35  ;;  %1283 = vmatprep.subr.bf16.mxu1 %v2612_v36  ;;  %v2668_v8 = vld [vmem:[#allocation2 + $0x424] ss:$16 sps:$4 sm:$0xff]   ;;  %v2666_v10 = vld [vmem:[#allocation2 + $0x420] ss:$16 sps:$4 sm:$0xff]   ;;  %v2705_v36 = vld [vmem:[#allocation2 + $0xe8] ss:$16 sps:$4 sm:$0xff]  }
  0x4a   :  { %1326 = vmatprep.subr.bf16.mxu0 %v2614_v37  ;;  %v2674_v12 = vld [vmem:[#allocation2 + $0x444] ss:$16 sps:$4 sm:$0xff]   ;;  %v2672_v14 = vld [vmem:[#allocation2 + $0x440] ss:$16 sps:$4 sm:$0xff]  }
  0x4b   :  { %v2680_v16 = vld [vmem:[#allocation2 + $0x464] ss:$16 sps:$4 sm:$0xff]   ;;  %v2678_v18 = vld [vmem:[#allocation2 + $0x460] ss:$16 sps:$4 sm:$0xff]  }
  0x4c   :  { %1284 = vmatpush1.bf16.msra.mxu1 %v2616_v38  ;;  %v2686_v20 = vld [vmem:[#allocation2 + $0x484] ss:$16 sps:$4 sm:$0xff]   ;;  %v2684_v22 = vld [vmem:[#allocation2 + $0x480] ss:$16 sps:$4 sm:$0xff]   ;;  %v2713_v38 = vld [vmem:[#allocation2 + $0x10c] ss:$16 sps:$4 sm:$0xff]  }
  0x4d   :  { %1327 = vmatpush1.bf16.msra.mxu0 %v2617_v39  ;;  %1285 = vmatprep.subr.bf16.mxu1 %v2618_v40  ;;  %v2692_v24 = vld [vmem:[#allocation2 + $0x4a4] ss:$16 sps:$4 sm:$0xff]   ;;  %v2690_v26 = vld [vmem:[#allocation2 + $0x4a0] ss:$16 sps:$4 sm:$0xff]   ;;  %v2711_v40 = vld [vmem:[#allocation2 + $0x108] ss:$16 sps:$4 sm:$0xff]  }
  0x4e   :  { %1328 = vmatprep.subr.bf16.mxu0 %v2620_v41  ;;  %v2698_v28 = vld [vmem:[#allocation2 + $0x4c4] ss:$16 sps:$4 sm:$0xff]   ;;  %v2696_v30 = vld [vmem:[#allocation2 + $0x4c0] ss:$16 sps:$4 sm:$0xff]  }
  0x4f   :  { %v2704_v32 = vld [vmem:[#allocation2 + $0x4e4] ss:$16 sps:$4 sm:$0xff]   ;;  %v2702_v35 = vld [vmem:[#allocation2 + $0x4e0] ss:$16 sps:$4 sm:$0xff]  }
  0x50   :  { %1286 = vmatpush1.bf16.msra.mxu1 %v2622_v42  ;;  %v3109_v34 = vld [vmem:[%s3206_s0 + $0x14] ss:$24 sps:$4 sm:$0xff]   ;;  %v2708_v39 = vld [vmem:[#allocation2 + $0x500] ss:$16 sps:$4 sm:$0xff]  }
  0x51   :  { %1329 = vmatpush1.bf16.msra.mxu0 %v2623_v43  ;;  %1287 = vmatprep.subr.bf16.mxu1 %v2624_v44  ;;  %v2710_v37 = vld [vmem:[#allocation2 + $0x504] ss:$16 sps:$4 sm:$0xff]   ;;  %v2719_v42 = vld [vmem:[#allocation2 + $0x12c] ss:$16 sps:$4 sm:$0xff]   ;;  %v2714_v43 = vld [vmem:[#allocation2 + $0x520] ss:$16 sps:$4 sm:$0xff]  }
  0x52   :  { %1330 = vmatprep.subr.bf16.mxu0 %v2626_v45  ;;  %v2716_v41 = vld [vmem:[#allocation2 + $0x524] ss:$16 sps:$4 sm:$0xff]   ;;  %v2717_v44 = vld [vmem:[#allocation2 + $0x128] ss:$16 sps:$4 sm:$0xff]  }
  0x53   :  { %v2722_v45 = vld [vmem:[#allocation2 + $0x544] ss:$16 sps:$4 sm:$0xff]  }
  0x54   :  { %1288 = vmatpush1.bf16.msra.mxu1 %v2628_v46  ;;  %v2725_v46 = vld [vmem:[#allocation2 + $0x14c] ss:$16 sps:$4 sm:$0xff]  }
  0x55   :  { %1331 = vmatpush1.bf16.msra.mxu0 %v2629_v47  ;;  %1289 = vmatprep.subr.bf16.mxu1 %v2630_v48  ;;  %v2720_v47 = vld [vmem:[#allocation2 + $0x540] ss:$16 sps:$4 sm:$0xff]   ;;  %v2723_v48 = vld [vmem:[#allocation2 + $0x148] ss:$16 sps:$4 sm:$0xff]  }
  0x56   :  { %1332 = vmatprep.subr.bf16.mxu0 %v2632_v50  ;;  %v2731_v50 = vld [vmem:[#allocation2 + $0x16c] ss:$16 sps:$4 sm:$0xff]  }
  0x58   :  { %1290 = vmatpush1.bf16.msra.mxu1 %v2634_v52  ;;  %v2726_v52 = vld [vmem:[#allocation2 + $0x560] ss:$16 sps:$4 sm:$0xff]  }
  0x59   :  { %1333 = vmatpush1.bf16.msra.mxu0 %v2635_v53  ;;  %1291 = vmatprep.subr.bf16.mxu1 %v2636_v54  ;;  %v2729_v53 = vld [vmem:[#allocation2 + $0x168] ss:$16 sps:$4 sm:$0xff]   ;;  %v2734_v54 = vld [vmem:[#allocation2 + $0x584] ss:$16 sps:$4 sm:$0xff]  }
  0x5a   :  { %1334 = vmatprep.subr.bf16.mxu0 %v2638_v55  ;;  %v2737_v55 = vld [vmem:[#allocation2 + $0x18c] ss:$16 sps:$4 sm:$0xff]  }
  0x5c   :  { %1292 = vmatpush1.bf16.msra.mxu1 %v2640_v56  ;;  %v2732_v56 = vld [vmem:[#allocation2 + $0x580] ss:$16 sps:$4 sm:$0xff]  }
  0x5d   :  { %1335 = vmatpush1.bf16.msra.mxu0 %v2641_v57  ;;  %1293 = vmatprep.subr.bf16.mxu1 %v2642_v58  ;;  %v2735_v57 = vld [vmem:[#allocation2 + $0x188] ss:$16 sps:$4 sm:$0xff]   ;;  %v2740_v58 = vld [vmem:[#allocation2 + $0x5a4] ss:$16 sps:$4 sm:$0xff]  }
  0x5e   :  { %1336 = vmatprep.subr.bf16.mxu0 %v2644_v59  ;;  %v2743_v59 = vld [vmem:[#allocation2 + $0x1ac] ss:$16 sps:$4 sm:$0xff]  }
  0x60   :  { %1294 = vmatpush1.bf16.msra.mxu1 %v2646_v60  ;;  %v2738_v60 = vld [vmem:[#allocation2 + $0x5a0] ss:$16 sps:$4 sm:$0xff]  }
  0x61   :  { %1337 = vmatpush1.bf16.msra.mxu0 %v2647_v61  ;;  %1295 = vmatprep.subr.bf16.mxu1 %v2648_v62  ;;  %v2741_v61 = vld [vmem:[#allocation2 + $0x1a8] ss:$16 sps:$4 sm:$0xff]   ;;  %v2746_v62 = vld [vmem:[#allocation2 + $0x5c4] ss:$16 sps:$4 sm:$0xff]  }
  0x62   :  { %1338 = vmatprep.subr.bf16.mxu0 %v2650_v63  ;;  %v2749_v63 = vld [vmem:[#allocation2 + $0x1cc] ss:$16 sps:$4 sm:$0xff]  }
  0x64   :  { %1296 = vmatpush1.bf16.msra.mxu1 %v2652_v0  ;;  %v2744_v0 = vld [vmem:[#allocation2 + $0x5c0] ss:$16 sps:$4 sm:$0xff]  }
  0x65   :  { %1339 = vmatpush1.bf16.msra.mxu0 %v2653_v1  ;;  %1394 = vmatprep.subr.bf16.mxu1 %v2665_v3  ;;  %v2747_v1 = vld [vmem:[#allocation2 + $0x1c8] ss:$16 sps:$4 sm:$0xff]   ;;  %v2755_v3 = vld [vmem:[#allocation2 + $0x1ec] ss:$16 sps:$4 sm:$0xff]  }
  0x66   :  { %1351 = vmatprep.subr.bf16.mxu0 %v2662_v2  ;;  %v2752_v2 = vld [vmem:[#allocation2 + $0x5e4] ss:$16 sps:$4 sm:$0xff]  }
  0x67   :  { %1298 = vmatmul.mubr.bf16.vlgmr.msra.gmra.mrb[0].mxu1 %v3097_v4 }
  0x68   :  { %1341 = vmatmul.mubr.bf16.vlgmr.msra.gmra.mrb[0].mxu0 %v3102_v5  ;;  %1395 = vmatpush1.bf16.msra.mxu1 %v2663_v7  ;;  %v2753_v7 = vld [vmem:[#allocation2 + $0x1e8] ss:$16 sps:$4 sm:$0xff]  }
  0x69   :  { %1352 = vmatpush1.bf16.msra.mxu0 %v2660_v6  ;;  %1396 = vmatprep.subr.bf16.mxu1 %v2671_v9  ;;  %v2750_v6 = vld [vmem:[#allocation2 + $0x5e0] ss:$16 sps:$4 sm:$0xff]  }
  0x6a   :  { %1353 = vmatprep.subr.bf16.mxu0 %v2668_v8  ;;  %1426 = vmatprep.mubr.bf16.mxu1 %v2656_v49  ;;  %v2728_v49 = vld [vmem:[#allocation2 + $0x564] ss:$16 sps:$4 sm:$0xff]   ;;  %v2761_v8 = vld [vmem:[#allocation2 + $0x20c] ss:$16 sps:$4 sm:$0xff]   ;;  %v3115_v9 = vld [vmem:[%s3206_s0 + $0x10] ss:$24 sps:$4 sm:$0xff]  }
  0x6b   :  { %1383 = vmatprep.mubr.bf16.mxu0 %v3109_v34 }
  0x6c   :  { %1397 = vmatpush1.bf16.msra.mxu1 %v2669_v11  ;;  %v2764_v11 = vld [vmem:[#allocation2 + $0x22c] ss:$16 sps:$4 sm:$0xff]  }
  0x6d   :  { %1354 = vmatpush1.bf16.msra.mxu0 %v2666_v10  ;;  %1398 = vmatprep.subr.bf16.mxu1 %v2677_v13  ;;  %v2759_v10 = vld [vmem:[#allocation2 + $0x208] ss:$16 sps:$4 sm:$0xff]   ;;  %v2767_v13 = vld [vmem:[#allocation2 + $0x24c] ss:$16 sps:$4 sm:$0xff]  }
  0x6e   :  { %1355 = vmatprep.subr.bf16.mxu0 %v2674_v12  ;;  %v2762_v12 = vld [vmem:[#allocation2 + $0x228] ss:$16 sps:$4 sm:$0xff]  }
  0x70   :  { %1399 = vmatpush1.bf16.msra.mxu1 %v2675_v15  ;;  %v2770_v15 = vld [vmem:[#allocation2 + $0x26c] ss:$16 sps:$4 sm:$0xff]  }
  0x71   :  { %1356 = vmatpush1.bf16.msra.mxu0 %v2672_v14  ;;  %1400 = vmatprep.subr.bf16.mxu1 %v2683_v17  ;;  %v2765_v14 = vld [vmem:[#allocation2 + $0x248] ss:$16 sps:$4 sm:$0xff]   ;;  %v2773_v17 = vld [vmem:[#allocation2 + $0x28c] ss:$16 sps:$4 sm:$0xff]  }
  0x72   :  { %1357 = vmatprep.subr.bf16.mxu0 %v2680_v16  ;;  %v2768_v16 = vld [vmem:[#allocation2 + $0x268] ss:$16 sps:$4 sm:$0xff]  }
  0x74   :  { %1401 = vmatpush1.bf16.msra.mxu1 %v2681_v19  ;;  %v2776_v19 = vld [vmem:[#allocation2 + $0x2ac] ss:$16 sps:$4 sm:$0xff]  }
  0x75   :  { %1358 = vmatpush1.bf16.msra.mxu0 %v2678_v18  ;;  %1402 = vmatprep.subr.bf16.mxu1 %v2689_v21  ;;  %v2771_v18 = vld [vmem:[#allocation2 + $0x288] ss:$16 sps:$4 sm:$0xff]  }
  0x76   :  { %1359 = vmatprep.subr.bf16.mxu0 %v2686_v20  ;;  %v2774_v20 = vld [vmem:[#allocation2 + $0x2a8] ss:$16 sps:$4 sm:$0xff]  }
  0x77   :  { %v2777_v21 = vld [vmem:[#allocation2 + $0x2c8] ss:$16 sps:$4 sm:$0xff]  }
  0x78   :  { %1403 = vmatpush1.bf16.msra.mxu1 %v2687_v23  ;;  %v2857_v23 = vld [vmem:[#allocation4 + $0x4] ss:$8 sps:$4 sm:$0xff]  }
  0x79   :  { %1360 = vmatpush1.bf16.msra.mxu0 %v2684_v22  ;;  %1404 = vmatprep.subr.bf16.mxu1 %v2695_v25  ;;  %v2782_v22 = vld [vmem:[#allocation2 + $0x2ec] ss:$16 sps:$4 sm:$0xff]   ;;  %v2780_v25 = vld [vmem:[#allocation2 + $0x2e8] ss:$16 sps:$4 sm:$0xff]  }
  0x7a   :  { %1361 = vmatprep.subr.bf16.mxu0 %v2692_v24  ;;  %v2860_v24 = vld [vmem:[#allocation4 + $0x14] ss:$8 sps:$4 sm:$0xff]  }
  0x7c   :  { %1405 = vmatpush1.bf16.msra.mxu1 %v2693_v27  ;;  %v2858_v27 = vld [vmem:[#allocation4 + $0x10] ss:$8 sps:$4 sm:$0xff]  }
  0x7d   :  { %1362 = vmatpush1.bf16.msra.mxu0 %v2690_v26  ;;  %1406 = vmatprep.subr.bf16.mxu1 %v2701_v29  ;;  %v2785_v26 = vld [vmem:[#allocation2 + $0x30c] ss:$16 sps:$4 sm:$0xff]   ;;  %v2783_v29 = vld [vmem:[#allocation2 + $0x308] ss:$16 sps:$4 sm:$0xff]  }
  0x7e   :  { %1363 = vmatprep.subr.bf16.mxu0 %v2698_v28  ;;  %v2863_v28 = vld [vmem:[#allocation4 + $0x24] ss:$8 sps:$4 sm:$0xff]  }
  0x80   :  { %1407 = vmatpush1.bf16.msra.mxu1 %v2699_v31  ;;  %v2861_v31 = vld [vmem:[#allocation4 + $0x20] ss:$8 sps:$4 sm:$0xff]  }
  0x81   :  { %1364 = vmatpush1.bf16.msra.mxu0 %v2696_v30  ;;  %1408 = vmatprep.subr.bf16.mxu1 %v2707_v33  ;;  %v2788_v30 = vld [vmem:[#allocation2 + $0x32c] ss:$16 sps:$4 sm:$0xff]  }
  0x82   :  { %1365 = vmatprep.subr.bf16.mxu0 %v2704_v32  ;;  %v2786_v32 = vld [vmem:[#allocation2 + $0x328] ss:$16 sps:$4 sm:$0xff]   ;;  %v2866_v33 = vld [vmem:[#allocation4 + $0x34] ss:$8 sps:$4 sm:$0xff]  }
  0x84   :  { %1409 = vmatpush1.bf16.msra.mxu1 %v2705_v36  ;;  %v2864_v36 = vld [vmem:[#allocation4 + $0x30] ss:$8 sps:$4 sm:$0xff]  }
  0x85   :  { %1366 = vmatpush1.bf16.msra.mxu0 %v2702_v35  ;;  %1410 = vmatprep.subr.bf16.mxu1 %v2713_v38  ;;  %v2791_v35 = vld [vmem:[#allocation2 + $0x34c] ss:$16 sps:$4 sm:$0xff]   ;;  %v2789_v38 = vld [vmem:[#allocation2 + $0x348] ss:$16 sps:$4 sm:$0xff]  }
  0x86   :  { %1367 = vmatprep.subr.bf16.mxu0 %v2710_v37  ;;  %v2869_v37 = vld [vmem:[#allocation4 + $0x44] ss:$8 sps:$4 sm:$0xff]  }
  0x88   :  { %1411 = vmatpush1.bf16.msra.mxu1 %v2711_v40  ;;  %v2867_v40 = vld [vmem:[#allocation4 + $0x40] ss:$8 sps:$4 sm:$0xff]  }
  0x89   :  { %1368 = vmatpush1.bf16.msra.mxu0 %v2708_v39  ;;  %1412 = vmatprep.subr.bf16.mxu1 %v2719_v42  ;;  %v2794_v39 = vld [vmem:[#allocation2 + $0x36c] ss:$16 sps:$4 sm:$0xff]   ;;  %v2792_v42 = vld [vmem:[#allocation2 + $0x368] ss:$16 sps:$4 sm:$0xff]  }
  0x8a   :  { %1369 = vmatprep.subr.bf16.mxu0 %v2716_v41  ;;  %v2872_v41 = vld [vmem:[#allocation4 + $0x54] ss:$8 sps:$4 sm:$0xff]  }
  0x8c   :  { %1413 = vmatpush1.bf16.msra.mxu1 %v2717_v44  ;;  %v2870_v44 = vld [vmem:[#allocation4 + $0x50] ss:$8 sps:$4 sm:$0xff]  }
  0x8d   :  { %1370 = vmatpush1.bf16.msra.mxu0 %v2714_v43  ;;  %1414 = vmatprep.subr.bf16.mxu1 %v2725_v46  ;;  %v2797_v43 = vld [vmem:[#allocation2 + $0x38c] ss:$16 sps:$4 sm:$0xff]   ;;  %v2795_v46 = vld [vmem:[#allocation2 + $0x388] ss:$16 sps:$4 sm:$0xff]  }
  0x8e   :  { %1371 = vmatprep.subr.bf16.mxu0 %v2722_v45  ;;  %v2875_v45 = vld [vmem:[#allocation4 + $0x64] ss:$8 sps:$4 sm:$0xff]  }
  0x90   :  { %1415 = vmatpush1.bf16.msra.mxu1 %v2723_v48  ;;  %v2873_v48 = vld [vmem:[#allocation4 + $0x60] ss:$8 sps:$4 sm:$0xff]  }
  0x91   :  { %1372 = vmatpush1.bf16.msra.mxu0 %v2720_v47  ;;  %1416 = vmatprep.subr.bf16.mxu1 %v2731_v50  ;;  %v2800_v47 = vld [vmem:[#allocation2 + $0x3ac] ss:$16 sps:$4 sm:$0xff]   ;;  %v2798_v50 = vld [vmem:[#allocation2 + $0x3a8] ss:$16 sps:$4 sm:$0xff]  }
  0x92   :  { %1373 = vmatprep.subr.bf16.mxu0 %v2728_v49  ;;  %v2878_v49 = vld [vmem:[#allocation4 + $0x74] ss:$8 sps:$4 sm:$0xff]  }
  0x94   :  { %1417 = vmatpush1.bf16.msra.mxu1 %v2729_v53  ;;  %v2876_v53 = vld [vmem:[#allocation4 + $0x70] ss:$8 sps:$4 sm:$0xff]  }
  0x95   :  { %1374 = vmatpush1.bf16.msra.mxu0 %v2726_v52  ;;  %1418 = vmatprep.subr.bf16.mxu1 %v2737_v55  ;;  %v2803_v52 = vld [vmem:[#allocation2 + $0x3cc] ss:$16 sps:$4 sm:$0xff]   ;;  %v2801_v55 = vld [vmem:[#allocation2 + $0x3c8] ss:$16 sps:$4 sm:$0xff]  }
  0x96   :  { %1375 = vmatprep.subr.bf16.mxu0 %v2734_v54  ;;  %v2881_v54 = vld [vmem:[#allocation4 + $0x84] ss:$8 sps:$4 sm:$0xff]  }
  0x98   :  { %1419 = vmatpush1.bf16.msra.mxu1 %v2735_v57  ;;  %v2879_v57 = vld [vmem:[#allocation4 + $0x80] ss:$8 sps:$4 sm:$0xff]  }
  0x99   :  { %1376 = vmatpush1.bf16.msra.mxu0 %v2732_v56  ;;  %1420 = vmatprep.subr.bf16.mxu1 %v2743_v59  ;;  %v2806_v56 = vld [vmem:[#allocation2 + $0x3ec] ss:$16 sps:$4 sm:$0xff]   ;;  %v2804_v59 = vld [vmem:[#allocation2 + $0x3e8] ss:$16 sps:$4 sm:$0xff]  }
  0x9a   :  { %1377 = vmatprep.subr.bf16.mxu0 %v2740_v58  ;;  %v2884_v58 = vld [vmem:[#allocation4 + $0x94] ss:$8 sps:$4 sm:$0xff]  }
  0x9c   :  { %1421 = vmatpush1.bf16.msra.mxu1 %v2741_v61  ;;  %v2882_v61 = vld [vmem:[#allocation4 + $0x90] ss:$8 sps:$4 sm:$0xff]  }
  0x9d   :  { %1378 = vmatpush1.bf16.msra.mxu0 %v2738_v60  ;;  %1422 = vmatprep.subr.bf16.mxu1 %v2749_v63  ;;  %v2809_v60 = vld [vmem:[#allocation2 + $0x40c] ss:$16 sps:$4 sm:$0xff]   ;;  %v2807_v63 = vld [vmem:[#allocation2 + $0x408] ss:$16 sps:$4 sm:$0xff]  }
  0x9e   :  { %1379 = vmatprep.subr.bf16.mxu0 %v2746_v62  ;;  %v2887_v62 = vld [vmem:[#allocation4 + $0xa4] ss:$8 sps:$4 sm:$0xff]  }
  0xa0   :  { %1423 = vmatpush1.bf16.msra.mxu1 %v2747_v1  ;;  %v2885_v1 = vld [vmem:[#allocation4 + $0xa0] ss:$8 sps:$4 sm:$0xff]  }
  0xa1   :  { %1380 = vmatpush1.bf16.msra.mxu0 %v2744_v0  ;;  %1424 = vmatprep.subr.bf16.mxu1 %v2755_v3  ;;  %v2812_v0 = vld [vmem:[#allocation2 + $0x42c] ss:$16 sps:$4 sm:$0xff]   ;;  %v2810_v3 = vld [vmem:[#allocation2 + $0x428] ss:$16 sps:$4 sm:$0xff]  }
  0xa2   :  { %1381 = vmatprep.subr.bf16.mxu0 %v2752_v2  ;;  %v2890_v2 = vld [vmem:[#allocation4 + $0xb4] ss:$8 sps:$4 sm:$0xff]  }
  0xa4   :  { %1425 = vmatpush1.bf16.msra.mxu1 %v2753_v7  ;;  %v2888_v7 = vld [vmem:[#allocation4 + $0xb0] ss:$8 sps:$4 sm:$0xff]  }
  0xa5   :  { %1382 = vmatpush1.bf16.msra.mxu0 %v2750_v6  ;;  %1437 = vmatprep.subr.bf16.mxu1 %v2761_v8  ;;  %v2815_v6 = vld [vmem:[#allocation2 + $0x44c] ss:$16 sps:$4 sm:$0xff]  }
  0xa6   :  { %1939 = vmatprep.subr.bf16.mxu0 %v2857_v23  ;;  %v2893_v8 = vld [vmem:[#allocation4 + $0xc4] ss:$8 sps:$4 sm:$0xff]   ;;  %v2902_v23 = vld [vmem:[#allocation4 + $0xf4] ss:$8 sps:$4 sm:$0xff]  }
  0xa7   :  { %1427 = vmatmul.mubr.bf16.vlgmr.msra.gmra.mrb[4].mxu1 %v3097_v4  ;;  %v2779_v4 = vld [vmem:[#allocation2 + $0x2cc] ss:$16 sps:$4 sm:$0xff]  }
  0xa8   :  { %1384 = vmatmul.mubr.bf16.vlgmr.msra.gmra.mrb[0].mxu0 %v3115_v9  ;;  %1438 = vmatpush1.bf16.msra.mxu1 %v2759_v10  ;;  %v2813_v10 = vld [vmem:[#allocation2 + $0x448] ss:$16 sps:$4 sm:$0xff]  }
  0xa9   :  { %1469 = vmatprep.mubr.bf16.mxu1 %v3091_v51  ;;  %1439 = vmatprep.subr.bf16.mxu1 %v2764_v11  ;;  %v2855_v51 = vld [vmem:[#allocation4] ss:$8 sps:$4 sm:$0xff]   ;;  %v2818_v11 = vld [vmem:[#allocation2 + $0x46c] ss:$16 sps:$4 sm:$0xff]  }
  0xaa   :  { %1940 = vmatpush1.bf16.msra.mxu0 %v2855_v51  ;;  %v2833_v51 = vld [vmem:[#allocation2 + $0x50c] ss:$16 sps:$4 sm:$0xff]  }
  0xab   :  { %1941 = vmatprep.subr.bf16.mxu0 %v2860_v24  ;;  %v2900_v24 = vld [vmem:[#allocation4 + $0xf0] ss:$8 sps:$4 sm:$0xff]  }
  0xac   :  { %1440 = vmatpush1.bf16.msra.mxu1 %v2762_v12  ;;  %v2891_v12 = vld [vmem:[#allocation4 + $0xc0] ss:$8 sps:$4 sm:$0xff]  }
  0xad   :  { %1441 = vmatprep.subr.bf16.mxu1 %v2767_v13  ;;  %v2816_v13 = vld [vmem:[#allocation2 + $0x468] ss:$16 sps:$4 sm:$0xff]  }
  0xae   :  { %1942 = vmatpush1.bf16.msra.mxu0 %v2858_v27  ;;  %v2905_v27 = vld [vmem:[#allocation4 + $0x104] ss:$8 sps:$4 sm:$0xff]  }
  0xaf   :  { %1943 = vmatprep.subr.bf16.mxu0 %v2863_v28  ;;  %v2834_v28 = vld [vmem:[#allocation2 + $0x528] ss:$16 sps:$4 sm:$0xff]  }
  0xb0   :  { %1442 = vmatpush1.bf16.msra.mxu1 %v2765_v14  ;;  %v2824_v14 = vld [vmem:[#allocation2 + $0x4ac] ss:$16 sps:$4 sm:$0xff]  }
  0xb1   :  { %1443 = vmatprep.subr.bf16.mxu1 %v2770_v15  ;;  %v2822_v15 = vld [vmem:[#allocation2 + $0x4a8] ss:$16 sps:$4 sm:$0xff]  }
  0xb2   :  { %1944 = vmatpush1.bf16.msra.mxu0 %v2861_v31  ;;  %v2842_v31 = vld [vmem:[#allocation2 + $0x56c] ss:$16 sps:$4 sm:$0xff]  }
  0xb3   :  { %1945 = vmatprep.subr.bf16.mxu0 %v2866_v33  ;;  %v2845_v33 = vld [vmem:[#allocation2 + $0x58c] ss:$16 sps:$4 sm:$0xff]  }
  0xb4   :  { %1444 = vmatpush1.bf16.msra.mxu1 %v2768_v16  ;;  %v2827_v16 = vld [vmem:[#allocation2 + $0x4cc] ss:$16 sps:$4 sm:$0xff]  }
  0xb5   :  { %1445 = vmatprep.subr.bf16.mxu1 %v2773_v17  ;;  %v2896_v17 = vld [vmem:[#allocation4 + $0xd4] ss:$8 sps:$4 sm:$0xff]  }
  0xb6   :  { %1946 = vmatpush1.bf16.msra.mxu0 %v2864_v36  ;;  %v2848_v36 = vld [vmem:[#allocation2 + $0x5ac] ss:$16 sps:$4 sm:$0xff]  }
  0xb7   :  { %1947 = vmatprep.subr.bf16.mxu0 %v2869_v37  ;;  %v2846_v37 = vld [vmem:[#allocation2 + $0x5a8] ss:$16 sps:$4 sm:$0xff]  }
  0xb8   :  { %1446 = vmatpush1.bf16.msra.mxu1 %v2771_v18  ;;  %v2894_v18 = vld [vmem:[#allocation4 + $0xd0] ss:$8 sps:$4 sm:$0xff]  }
  0xb9   :  { %1447 = vmatprep.subr.bf16.mxu1 %v2776_v19  ;;  %v2825_v19 = vld [vmem:[#allocation2 + $0x4c8] ss:$16 sps:$4 sm:$0xff]  }
  0xba   :  { %1948 = vmatpush1.bf16.msra.mxu0 %v2867_v40  ;;  %v2854_v40 = vld [vmem:[#allocation2 + $0x5ec] ss:$16 sps:$4 sm:$0xff]  }
  0xbb   :  { %1949 = vmatprep.subr.bf16.mxu0 %v2872_v41  ;;  %v2852_v41 = vld [vmem:[#allocation2 + $0x5e8] ss:$16 sps:$4 sm:$0xff]  }
  0xbc   :  { %1448 = vmatpush1.bf16.msra.mxu1 %v2774_v20  ;;  %v2830_v20 = vld [vmem:[#allocation2 + $0x4ec] ss:$16 sps:$4 sm:$0xff]  }
  0xbd   :  { %1449 = vmatprep.subr.bf16.mxu1 %v2779_v4  ;;  %v2899_v4 = vld [vmem:[#allocation4 + $0xe4] ss:$8 sps:$4 sm:$0xff]  }
  0xbe   :  { %1950 = vmatpush1.bf16.msra.mxu0 %v2870_v44 }
  0xbf   :  { %1951 = vmatprep.subr.bf16.mxu0 %v2875_v45 }
  0xc0   :  { %1450 = vmatpush1.bf16.msra.mxu1 %v2777_v21  ;;  %v2897_v21 = vld [vmem:[#allocation4 + $0xe0] ss:$8 sps:$4 sm:$0xff]  }
  0xc1   :  { %1451 = vmatprep.subr.bf16.mxu1 %v2782_v22  ;;  %v2828_v22 = vld [vmem:[#allocation2 + $0x4e8] ss:$16 sps:$4 sm:$0xff]  }
  0xc2   :  { %1952 = vmatpush1.bf16.msra.mxu0 %v2873_v48 }
  0xc3   :  { %1953 = vmatprep.subr.bf16.mxu0 %v2878_v49  ;;  %v3129_v49 = vld [vmem:[%s3208_s2] sm:$0xf] }
  0xc4   :  { %1452 = vmatpush1.bf16.msra.mxu1 %v2780_v25  ;;  %v2831_v25 = vld [vmem:[#allocation2 + $0x508] ss:$16 sps:$4 sm:$0xff]  }
  0xc5   :  { %1453 = vmatprep.subr.bf16.mxu1 %v2785_v26  ;;  %v2836_v26 = vld [vmem:[#allocation2 + $0x52c] ss:$16 sps:$4 sm:$0xff]  }
  0xc6   :  { %1954 = vmatpush1.bf16.msra.mxu0 %v2876_v53 }
  0xc7   :  { %1955 = vmatprep.subr.bf16.mxu0 %v2881_v54 }
  0xc8   :  { %1454 = vmatpush1.bf16.msra.mxu1 %v2783_v29  ;;  %v2839_v29 = vld [vmem:[#allocation2 + $0x54c] ss:$16 sps:$4 sm:$0xff]  }
  0xc9   :  { %1455 = vmatprep.subr.bf16.mxu1 %v2788_v30  ;;  %v2837_v30 = vld [vmem:[#allocation2 + $0x548] ss:$16 sps:$4 sm:$0xff]  }
  0xca   :  { %1956 = vmatpush1.bf16.msra.mxu0 %v2879_v57 }
  0xcb   :  { %1957 = vmatprep.subr.bf16.mxu0 %v2884_v58 }
  0xcc   :  { %1456 = vmatpush1.bf16.msra.mxu1 %v2786_v32  ;;  %v2840_v32 = vld [vmem:[#allocation2 + $0x568] ss:$16 sps:$4 sm:$0xff]  }
  0xcd   :  { %1457 = vmatprep.subr.bf16.mxu1 %v2791_v35  ;;  %v2843_v35 = vld [vmem:[#allocation2 + $0x588] ss:$16 sps:$4 sm:$0xff]  }
  0xce   :  { %1958 = vmatpush1.bf16.msra.mxu0 %v2882_v61 }
  0xcf   :  { %1959 = vmatprep.subr.bf16.mxu0 %v2887_v62 }
  0xd0   :  { %1458 = vmatpush1.bf16.msra.mxu1 %v2789_v38  ;;  %v2851_v38 = vld [vmem:[#allocation2 + $0x5cc] ss:$16 sps:$4 sm:$0xff]  }
  0xd1   :  { %1459 = vmatprep.subr.bf16.mxu1 %v2794_v39  ;;  %v2849_v39 = vld [vmem:[#allocation2 + $0x5c8] ss:$16 sps:$4 sm:$0xff]  }
  0xd2   :  { %1960 = vmatpush1.bf16.msra.mxu0 %v2885_v1 }
  0xd3   :  { %1961 = vmatprep.subr.bf16.mxu0 %v2890_v2 }
  0xd4   :  { %1460 = vmatpush1.bf16.msra.mxu1 %v2792_v42 }
  0xd5   :  { %1461 = vmatprep.subr.bf16.mxu1 %v2797_v43 }
  0xd6   :  { %1962 = vmatpush1.bf16.msra.mxu0 %v2888_v7 }
  0xd7   :  { %1963 = vmatprep.subr.bf16.mxu0 %v2893_v8 }
  0xd8   :  { %1462 = vmatpush1.bf16.msra.mxu1 %v2795_v46  ;;  %v255_v46 = vlaneseq }
  0xd9   :  { %1463 = vmatprep.subr.bf16.mxu1 %v2800_v47 }
  0xda   :  { %1964 = vmatpush1.bf16.msra.mxu0 %v2891_v12  ;;  %v3123_v47 = vshrl.u32 %v255_v46, 7  ;;  %v2944_v46 = vld [vmem:[#allocation4 + $0x1d4] ss:$8 sps:$4 sm:$0xff]  }
  0xdb   :  { %1965 = vmatprep.subr.bf16.mxu0 %v2896_v17  ;;  %v2906_v17 = vld [vmem:[#allocation4 + $0x110] ss:$8 sps:$4 sm:$0xff]  }
  0xdc   :  { %1464 = vmatpush1.bf16.msra.mxu1 %v2798_v50  ;;  %v257_v48 = vsub.s32 0, %v3123_v47  ;;  %v261_v50 = vsub.s32 1, %v3123_v47 }
  0xdd   :  { %1465 = vmatprep.subr.bf16.mxu1 %v2803_v52 }
  0xde   :  { %1966 = vmatpush1.bf16.msra.mxu0 %v2894_v18  ;;  %v262_v52 = vrot.slane %v3129_v49, %v261_v50  ;;  %v2911_v18 = vld [vmem:[#allocation4 + $0x124] ss:$8 sps:$4 sm:$0xff]  }
  0xdf   :  { %1967 = vmatprep.subr.bf16.mxu0 %v2899_v4  ;;  %v2909_v4 = vld [vmem:[#allocation4 + $0x120] ss:$8 sps:$4 sm:$0xff]  }
  0xe0   :  { %1466 = vmatpush1.bf16.msra.mxu1 %v2801_v55 }
  0xe1   :  { %1467 = vmatprep.subr.bf16.mxu1 %v2806_v56 }
  0xe2   :  { %1968 = vmatpush1.bf16.msra.mxu0 %v2897_v21  ;;  %v2914_v21 = vld [vmem:[#allocation4 + $0x134] ss:$8 sps:$4 sm:$0xff]  }
  0xe3   :  { %1969 = vmatprep.subr.bf16.mxu0 %v2902_v23  ;;  %v2912_v23 = vld [vmem:[#allocation4 + $0x130] ss:$8 sps:$4 sm:$0xff]  }
  0xe4   :  { %1468 = vmatpush1.bf16.msra.mxu1 %v2804_v59 }
  0xe5   :  { %1480 = vmatprep.subr.bf16.mxu1 %v2809_v60 }
  0xe6   :  { %1970 = vmatpush1.bf16.msra.mxu0 %v2900_v24  ;;  %v2917_v24 = vld [vmem:[#allocation4 + $0x144] ss:$8 sps:$4 sm:$0xff]  }
  0xe7   :  { %1470 = vmatmul.mubr.bf16.vlgmr.msra.gmra.mrb[4].mxu1 %v3102_v5  ;;  %v2821_v5 = vld [vmem:[#allocation2 + $0x48c] ss:$16 sps:$4 sm:$0xff]   ;;  %1982 = vmatprep.subr.bf16.mxu0 %v2905_v27  ;;  %v2915_v27 = vld [vmem:[#allocation4 + $0x140] ss:$8 sps:$4 sm:$0xff]  }
  0xe8   :  { %1481 = vmatpush1.bf16.msra.mxu1 %v2807_v63  ;;  %1512 = vmatprep.mubr.bf16.mxu1 %v3109_v34  ;;  %v2819_v34 = vld [vmem:[#allocation2 + $0x488] ss:$16 sps:$4 sm:$0xff]  }
  0xe9   :  { %1482 = vmatprep.subr.bf16.mxu1 %v2812_v0 }
  0xec   :  { %1483 = vmatpush1.bf16.msra.mxu1 %v2810_v3 }
  0xed   :  { %1484 = vmatprep.subr.bf16.mxu1 %v2815_v6 }
  0xf0   :  { %1485 = vmatpush1.bf16.msra.mxu1 %v2813_v10 }
  0xf1   :  { %1486 = vmatprep.subr.bf16.mxu1 %v2818_v11 }
  0xf4   :  { %1487 = vmatpush1.bf16.msra.mxu1 %v2816_v13 }
  0xf5   :  { %1488 = vmatprep.subr.bf16.mxu1 %v2821_v5  ;;  %v2903_v5 = vld [vmem:[#allocation4 + $0x100] ss:$8 sps:$4 sm:$0xff]  }
  0xf8   :  { %1489 = vmatpush1.bf16.msra.mxu1 %v2819_v34  ;;  %v2908_v34 = vld [vmem:[#allocation4 + $0x114] ss:$8 sps:$4 sm:$0xff]  }
  0xf9   :  { %1490 = vmatprep.subr.bf16.mxu1 %v2824_v14  ;;  %v2951_v14 = vld [vmem:[%s3211_s5 + $0x40] sm:$0xff]  }
  0xfc   :  { %1491 = vmatpush1.bf16.msra.mxu1 %v2822_v15  ;;  %v2952_v15 = vld [vmem:[%s3211_s5] sm:$0xff]  }
  0xfd   :  { %1492 = vmatprep.subr.bf16.mxu1 %v2827_v16  ;;  %v2953_v16 = vld [vmem:[%s3211_s5 + $0x48] sm:$0xff]  }
 0x100   :  { %1493 = vmatpush1.bf16.msra.mxu1 %v2825_v19  ;;  %v2954_v19 = vld [vmem:[%s3211_s5 + $0x8] sm:$0xff]  }
 0x101   :  { %1494 = vmatprep.subr.bf16.mxu1 %v2830_v20  ;;  %v2955_v20 = vld [vmem:[%s3211_s5 + $0x50] sm:$0xff]  }
 0x104   :  { %1495 = vmatpush1.bf16.msra.mxu1 %v2828_v22  ;;  %v2956_v22 = vld [vmem:[%s3211_s5 + $0x10] sm:$0xff]  }
 0x105   :  { %1496 = vmatprep.subr.bf16.mxu1 %v2833_v51  ;;  %v2957_v51 = vld [vmem:[%s3211_s5 + $0x58] sm:$0xff]  }
 0x108   :  { %1497 = vmatpush1.bf16.msra.mxu1 %v2831_v25  ;;  %v2958_v25 = vld [vmem:[%s3211_s5 + $0x18] sm:$0xff]  }
 0x109   :  { %1498 = vmatprep.subr.bf16.mxu1 %v2836_v26  ;;  %v2959_v26 = vld [vmem:[%s3211_s5 + $0x60] sm:$0xff]  }
 0x10c   :  { %1499 = vmatpush1.bf16.msra.mxu1 %v2834_v28  ;;  %v2920_v28 = vld [vmem:[#allocation4 + $0x154] ss:$8 sps:$4 sm:$0xff]  }
 0x10d   :  { %1500 = vmatprep.subr.bf16.mxu1 %v2839_v29  ;;  %v2960_v29 = vld [vmem:[%s3211_s5 + $0x20] sm:$0xff]  }
 0x110   :  { %1501 = vmatpush1.bf16.msra.mxu1 %v2837_v30  ;;  %v2918_v30 = vld [vmem:[#allocation4 + $0x150] ss:$8 sps:$4 sm:$0xff]  }
 0x111   :  { %1502 = vmatprep.subr.bf16.mxu1 %v2842_v31  ;;  %v2923_v31 = vld [vmem:[#allocation4 + $0x164] ss:$8 sps:$4 sm:$0xff]  }
 0x114   :  { %1503 = vmatpush1.bf16.msra.mxu1 %v2840_v32  ;;  %v2921_v32 = vld [vmem:[#allocation4 + $0x160] ss:$8 sps:$4 sm:$0xff]  }
 0x115   :  { %1504 = vmatprep.subr.bf16.mxu1 %v2845_v33  ;;  %v2926_v33 = vld [vmem:[#allocation4 + $0x174] ss:$8 sps:$4 sm:$0xff]  }
 0x118   :  { %1505 = vmatpush1.bf16.msra.mxu1 %v2843_v35  ;;  %v2924_v35 = vld [vmem:[#allocation4 + $0x170] ss:$8 sps:$4 sm:$0xff]  }
 0x119   :  { %1506 = vmatprep.subr.bf16.mxu1 %v2848_v36  ;;  %v2929_v36 = vld [vmem:[#allocation4 + $0x184] ss:$8 sps:$4 sm:$0xff]  }
 0x11c   :  { %1507 = vmatpush1.bf16.msra.mxu1 %v2846_v37  ;;  %v2927_v37 = vld [vmem:[#allocation4 + $0x180] ss:$8 sps:$4 sm:$0xff]  }
 0x11d   :  { %1508 = vmatprep.subr.bf16.mxu1 %v2851_v38  ;;  %v2932_v38 = vld [vmem:[#allocation4 + $0x194] ss:$8 sps:$4 sm:$0xff]  }
 0x120   :  { %1509 = vmatpush1.bf16.msra.mxu1 %v2849_v39  ;;  %v2930_v39 = vld [vmem:[#allocation4 + $0x190] ss:$8 sps:$4 sm:$0xff]  }
 0x121   :  { %1510 = vmatprep.subr.bf16.mxu1 %v2854_v40  ;;  %v2935_v40 = vld [vmem:[#allocation4 + $0x1a4] ss:$8 sps:$4 sm:$0xff]  }
 0x124   :  { %1511 = vmatpush1.bf16.msra.mxu1 %v2852_v41  ;;  %v2933_v41 = vld [vmem:[#allocation4 + $0x1a0] ss:$8 sps:$4 sm:$0xff]  }
 0x125   :  { %2498 = vmatprep.subr.bf16.mxu1 %v2951_v14 }
 0x127   :  { %1513 = vmatmul.mubr.bf16.vlgmr.msra.gmra.mrb[4].mxu1 %v3115_v9  ;;  %v258_v9 = vrot.slane %v3129_v49, %v257_v48 }
 0x128   :  { %2499 = vmatpush3.bf16.msra.mxu1 %v2952_v15  ;;  %v2962_v15 = vld [vmem:[%s3211_s5 + $0x28] sm:$0xff]  }
 0x129   :  { %2500 = vmatprep.subr.bf16.mxu1 %v2953_v16  ;;  %v2963_v16 = vld [vmem:[%s3211_s5 + $0x70] sm:$0xff]  }
 0x12c   :  { %2501 = vmatpush3.bf16.msra.mxu1 %v2954_v19  ;;  %v2966_v19 = vld [vmem:[%s3211_s5 + $0x38] sm:$0xff]  }
 0x12d   :  { %2502 = vmatprep.subr.bf16.mxu1 %v2955_v20  ;;  %v1607_v20 = vld [vmem:[%s3210_s4] sm:$0x3] }
 0x130   :  { %2503 = vmatpush3.bf16.msra.mxu1 %v2956_v22 }
 0x131   :  { %2504 = vmatprep.subr.bf16.mxu1 %v2957_v51 }
 0x134   :  { %2505 = vmatpush3.bf16.msra.mxu1 %v2958_v25 }
 0x135   :  { %2506 = vmatprep.subr.bf16.mxu1 %v2959_v26 }
 0x138   :  { %2507 = vmatpush3.bf16.msra.mxu1 %v2960_v29 }
 0x13a   :  { %v1299_v42 = vpop.f32.mrb[0].mxu1 }
 0x13b   :  { %v1301_v43 = vpop.f32.mrb[1].mxu1  ;;  %v1300_v53 = vadd.f32 %v1299_v42, %v258_v9  ;;  %v2938_v42 = vld [vmem:[#allocation4 + $0x1b4] ss:$8 sps:$4 sm:$0xff]  }
 0x13c   :  { %v1303_v44 = vpop.f32.mrb[2].mxu1  ;;  %v1302_v54 = vadd.f32 %v1301_v43, %v262_v52  ;;  %v2936_v43 = vld [vmem:[#allocation4 + $0x1b0] ss:$8 sps:$4 sm:$0xff]  }
 0x13d   :  { %v1305_v45 = vpop.f32.mrb[3].mxu1  ;;  %v1304_v56 = vadd.f32 %v1303_v44, %v258_v9  ;;  %v2941_v44 = vld [vmem:[#allocation4 + $0x1c4] ss:$8 sps:$4 sm:$0xff]   ;;  %v2942_v9 = vld [vmem:[#allocation4 + $0x1d0] ss:$8 sps:$4 sm:$0xff]  }
 0x13e   :  { %v1306_v59 = vadd.f32 %v1305_v45, %v262_v52  ;;  %v2939_v45 = vld [vmem:[#allocation4 + $0x1c0] ss:$8 sps:$4 sm:$0xff]   ;;  %v2947_v52 = vld [vmem:[#allocation4 + $0x1e4] ss:$8 sps:$4 sm:$0xff]  }
 0x17b   :  { %v1385_v55 = vpop.f32.mrb[0].mxu0 }
 0x17c   :  { %v2521_v57 = vadd.f32 %v1385_v55, %v1300_v53  ;;  %v1387_v58 = vpop.f32.mrb[1].mxu0  ;;  %v2945_v53 = vld [vmem:[#allocation4 + $0x1e0] ss:$8 sps:$4 sm:$0xff]   ;;  %v2948_v55 = vld [vmem:[#allocation4 + $0x1f0] ss:$8 sps:$4 sm:$0xff]  }
 0x17d   :  { %v2523_v60 = vadd.f32 %v1387_v58, %v1302_v54  ;;  %v1389_v61 = vpop.f32.mrb[2].mxu0  ;;  %v2950_v54 = vld [vmem:[#allocation4 + $0x1f4] ss:$8 sps:$4 sm:$0xff]  }
 0x17e   :  { %v1523_v62 = vmul.f32 0.01, %v2521_v57  ;;  %v2525_v63 = vadd.f32 %v1389_v61, %v1304_v56  ;;  %v1391_v0 = vpop.f32.mrb[3].mxu0  ;;  %v265_v56 = vsub.s32 2, %v3123_v47 }
 0x17f   :  { %v1524_v1 = vmul.f32 0.01, %v2523_v60  ;;  %v2527_v2 = vadd.f32 %v1391_v0, %v1306_v59 }
 0x180   :  { %v1527_v3 = vmul.f32 0.01, %v2525_v63  ;;  %v1531_v7 = vmax.f32 %v2521_v57, %v1523_v62  ;;  %v269_v57 = vsub.s32 3, %v3123_v47  ;;  %v266_v58 = vrot.slane %v3129_v49, %v265_v56 }
 0x181   :  { %v1528_v6 = vmul.f32 0.01, %v2527_v2  ;;  %v1532_v10 = vmax.f32 %v2523_v60, %v1524_v1 }
 0x182   :  { %v1535_v8 = vmax.f32 %v2525_v63, %v1527_v3  ;;  %v270_v59 = vrot.slane %v3129_v49, %v269_v57  ;;  %v2961_v49 = vld [vmem:[%s3211_s5 + $0x68] sm:$0xff]  }
 0x183   :  { %v1536_v11 = vmax.f32 %v2527_v2, %v1528_v6  ;;  %2508 = vmatprep.subr.bf16.mxu1 %v2961_v49 }
 0x184   :  { %v1539_v12 = vpack.c.bf16 %v1535_v8, %v1531_v7  ;;  %2509 = vmatpush3.bf16.msra.mxu1 %v2962_v15 }
 0x185   :  { %v1540_v13 = vpack.c.bf16 %v1536_v11, %v1532_v10  ;;  %2510 = vmatprep.subr.bf16.mxu1 %v2963_v16 }
 0x187   :  { %1971 = vmatprep.mubr.bf16.mxu0 %v1540_v13 }
 0x188   :  { %1972 = vmatmul.mubr.bf16.vlgmr.msra.gmra.mrb[4].mxu0 %v1539_v12 }
 0x189   :  { %1983 = vmatpush1.bf16.msra.mxu0 %v2903_v5 }
 0x18a   :  { %1984 = vmatprep.subr.bf16.mxu0 %v2908_v34 }
 0x18d   :  { %1985 = vmatpush1.bf16.msra.mxu0 %v2906_v17  ;;  %v2964_v17 = vld [vmem:[%s3211_s5 + $0x30] sm:$0xff]  }
 0x18e   :  { %1986 = vmatprep.subr.bf16.mxu0 %v2911_v18  ;;  %2511 = vmatpush3.bf16.msra.mxu1 %v2964_v17  ;;  %v2965_v18 = vld [vmem:[%s3211_s5 + $0x78] sm:$0xff]  }
 0x18f   :  { %2512 = vmatprep.subr.bf16.mxu1 %v2965_v18 }
 0x191   :  { %1987 = vmatpush1.bf16.msra.mxu0 %v2909_v4  ;;  %v1612_v4 = vrot.slane %v1607_v20, %v257_v48 }
 0x192   :  { %1988 = vmatprep.subr.bf16.mxu0 %v2914_v21  ;;  %2513 = vmatpush3.bf16.msra.mxu1 %v2966_v19  ;;  %v1616_v21 = vrot.slane %v1607_v20, %v261_v50  ;;  %v2481_v50 = vld [vmem:[%s3212_s6] ss:$0 sm:$0xff] }
 0x195   :  { %1989 = vmatpush1.bf16.msra.mxu0 %v2912_v23 }
 0x196   :  { %1990 = vmatprep.subr.bf16.mxu0 %v2917_v24 }
 0x199   :  { %1991 = vmatpush1.bf16.msra.mxu0 %v2915_v27 }
 0x19a   :  { %1992 = vmatprep.subr.bf16.mxu0 %v2920_v28 }
 0x19d   :  { %1993 = vmatpush1.bf16.msra.mxu0 %v2918_v30 }
 0x19e   :  { %1994 = vmatprep.subr.bf16.mxu0 %v2923_v31 }
 0x1a1   :  { %1995 = vmatpush1.bf16.msra.mxu0 %v2921_v32 }
 0x1a2   :  { %1996 = vmatprep.subr.bf16.mxu0 %v2926_v33 }
 0x1a5   :  { %1997 = vmatpush1.bf16.msra.mxu0 %v2924_v35 }
 0x1a6   :  { %1998 = vmatprep.subr.bf16.mxu0 %v2929_v36 }
 0x1a9   :  { %1999 = vmatpush1.bf16.msra.mxu0 %v2927_v37 }
 0x1aa   :  { %2000 = vmatprep.subr.bf16.mxu0 %v2932_v38 }
 0x1ad   :  { %2001 = vmatpush1.bf16.msra.mxu0 %v2930_v39 }
 0x1ae   :  { %2002 = vmatprep.subr.bf16.mxu0 %v2935_v40 }
 0x1b1   :  { %2003 = vmatpush1.bf16.msra.mxu0 %v2933_v41 }
 0x1b2   :  { %2004 = vmatprep.subr.bf16.mxu0 %v2938_v42 }
 0x1b5   :  { %2005 = vmatpush1.bf16.msra.mxu0 %v2936_v43 }
 0x1b6   :  { %2006 = vmatprep.subr.bf16.mxu0 %v2941_v44 }
 0x1b9   :  { %2007 = vmatpush1.bf16.msra.mxu0 %v2939_v45 }
 0x1ba   :  { %2008 = vmatprep.subr.bf16.mxu0 %v2944_v46 }
 0x1bd   :  { %2009 = vmatpush1.bf16.msra.mxu0 %v2942_v9 }
 0x1be   :  { %2010 = vmatprep.subr.bf16.mxu0 %v2947_v52 }
 0x1c1   :  { %2011 = vmatpush1.bf16.msra.mxu0 %v2945_v53 }
 0x1c2   :  { %2012 = vmatprep.subr.bf16.mxu0 %v2950_v54 }
 0x1c5   :  { %2013 = vmatpush1.bf16.msra.mxu0 %v2948_v55 }
 0x1fa   :  { %v1514_v60 = vpop.f32.mrb[4].mxu1 }
 0x1fb   :  { %v2528_v61 = vadd.f32 %v1514_v60, %v266_v58  ;;  %v1516_v62 = vpop.f32.mrb[5].mxu1 }
 0x1fc   :  { %v2529_v63 = vadd.f32 %v1516_v62, %v270_v59  ;;  %v1518_v0 = vpop.f32.mrb[6].mxu1 }
 0x1fd   :  { %v1525_v1 = vmul.f32 0.01, %v2528_v61  ;;  %v2530_v2 = vadd.f32 %v1518_v0, %v266_v58  ;;  %v1520_v3 = vpop.f32.mrb[7].mxu1 }
 0x1fe   :  { %v1526_v6 = vmul.f32 0.01, %v2529_v63  ;;  %v2531_v7 = vadd.f32 %v1520_v3, %v270_v59 }
 0x1ff   :  { %v1529_v8 = vmul.f32 0.01, %v2530_v2  ;;  %v1533_v11 = vmax.f32 %v2528_v61, %v1525_v1 }
 0x200   :  { %v1530_v10 = vmul.f32 0.01, %v2531_v7  ;;  %v1534_v13 = vmax.f32 %v2529_v63, %v1526_v6 }
 0x201   :  { %v1537_v12 = vmax.f32 %v2530_v2, %v1529_v8 }
 0x202   :  { %v1538_v5 = vmax.f32 %v2531_v7, %v1530_v10 }
 0x203   :  { %v1541_v34 = vpack.c.bf16 %v1537_v12, %v1533_v11 }
 0x204   :  { %v1542_v14 = vpack.c.bf16 %v1538_v5, %v1534_v13 }
 0x206   :  { %2014 = vmatprep.mubr.bf16.mxu0 %v1542_v14 }
 0x207   :  { %2015 = vmatmul.mubr.bf16.vlgmr.msra.gmra.mrb[4].mxu0 %v1541_v34 }
 0x2da   :  { %v2016_v22 = vpop.f32.mrb[4].mxu0 }
 0x2db   :  { %v2532_v51 = vadd.f32 %v2016_v22, %v1612_v4  ;;  %v2018_v23 = vpop.f32.mrb[5].mxu0 }
 0x2dc   :  { %v2533_v24 = vadd.f32 %v2018_v23, %v1616_v21  ;;  %v2020_v25 = vpop.f32.mrb[6].mxu0 }
 0x2dd   :  { %v2025_v26 = vmul.f32 0.01, %v2532_v51  ;;  %v2534_v27 = vadd.f32 %v2020_v25, %v1612_v4  ;;  %v2022_v28 = vpop.f32.mrb[7].mxu0 }
 0x2de   :  { %v2026_v29 = vmul.f32 0.01, %v2533_v24  ;;  %v2535_v30 = vadd.f32 %v2022_v28, %v1616_v21 }
 0x2df   :  { %v2027_v31 = vmul.f32 0.01, %v2534_v27  ;;  %v2029_v33 = vmax.f32 %v2532_v51, %v2025_v26 }
 0x2e0   :  { %v2028_v32 = vmul.f32 0.01, %v2535_v30  ;;  %v2030_v36 = vmax.f32 %v2533_v24, %v2026_v29 }
 0x2e1   :  { %v2031_v35 = vmax.f32 %v2534_v27, %v2027_v31 }
 0x2e2   :  { %v2032_v37 = vmax.f32 %v2535_v30, %v2028_v32 }
 0x2e3   :  { %v2033_v48 = vpack.c.bf16 %v2031_v35, %v2029_v33 }
 0x2e4   :  { %v2034_v38 = vpack.c.bf16 %v2032_v37, %v2030_v36 }
 0x2e6   :  { %2202 = vmatprep.mubr.bf16.mxu1 %v2034_v38 }
 0x2e7   :  { %2203 = vmatmul.mubr.bf16.vlgmr.msra.gmra.mrb[8].mxu1 %v2033_v48 }
 0x3ba   :  { %v2514_v47 = vpop.f32.mrb[8].mxu1 }
 0x3bb   :  { %v2515_v39 = vpop.f32.mrb[9].mxu1 }
 0x3bc   :  { %v2516_v40 = vadd.f32 %v2515_v39, %v2514_v47  ;;  %v2517_v41 = vpop.f32.mrb[10].mxu1 }
 0x3bd   :  { %v2518_v42 = vpop.f32.mrb[11].mxu1 }
 0x3be   :  { %v2205_v43 = vadd.f32 %v2516_v40, %v2481_v50  ;;  %v2519_v44 = vadd.f32 %v2518_v42, %v2517_v41 }
 0x3c0   :  { %2211 = vst [vmem:[%s3213_s7] sm:$0xff] %v2205_v43  ;;  %v2208_v45 = vadd.f32 %v2519_v44, %v2481_v50 }
 0x3c2   :  { %2212 = vst [vmem:[%s3213_s7 + $0x8] sm:$0xff] %v2208_v45 }
 0x3c3   :  { %2217 = vsyncpa [#allocation3], 1 }
 0x3c4   :  { %2218 = vsyncpa [#allocation5], 1 }

</bundles_post_ra>
